<compile_context>
chip_gen: v5e
topology: v5e:2x2
jax: 0.10.0
libtpu: 0.0.40
codegen_flags: <defaults>
</compile_context>

<pallas_src>
import functools

import jax
import jax.numpy as jnp
from jax import lax
from jax.experimental import pallas as pl
from jax.experimental.pallas import tpu as pltpu


# -----------------------------------------------------------------------------
# Fused Pallas kernel: all MSG scales + full batch, single invocation.
#   x_ref : (R, C_pad) bf16,  R = G * sum(Ks), rows of scale s stacked in order,
#           scale-s input channels living at its block-diag column offset.
#   w_ref : (L, C_pad, C_pad) bf16  block-diagonal BN-folded weights per layer.
#   b_ref : (L, 1, C_pad) f32       per-layer biases at the block-diag offsets.
#   out   : (G, C_pad) f32          scale-s pooled channels at lane offset
#                                   out_offsets[s]; lane-dense unmasked store.
# -----------------------------------------------------------------------------
def _make_fused_msg_kernel(G, Ks, n_layers, out_offsets, C_pad):
    n_scales = len(Ks)

    def kernel(x_ref, w_ref, b_ref, out_ref):
        h = x_ref[...]                                        # (R, C_pad) bf16
        for l in range(n_layers):
            acc = jnp.dot(h, w_ref[l],                        # MXU, bf16 in / f32 acc
                          preferred_element_type=jnp.float32)
            act = jnp.maximum(acc + b_ref[l], 0.0)            # folded-BN bias + ReLU
            # Keep bf16 between layers (half vreg/vld traffic); last layer stays
            # f32 for the pool + output store.
            h = act if l == n_layers - 1 else act.astype(jnp.bfloat16)

        # Per-scale max-pool over K neighbours, then assemble the "concat" as a
        # pure lane select (each scale's channels already sit at their final
        # lane offset thanks to the block-diagonal weights).
        lane = lax.broadcasted_iota(jnp.int32, (G, C_pad), 1)
        pooled = None
        row = 0
        for s in range(n_scales):
            K = Ks[s]
            p = jnp.max(h[row:row + G * K].reshape(G, K, C_pad), axis=1)
            pooled = p if pooled is None else jnp.where(lane < out_offsets[s],
                                                        pooled, p)
            row += G * K
        out_ref[...] = pooled                                  # (G, 128) f32, lane-dense

    return kernel


def msg_mlp_pool_fused(x_comb, w_slab, b_slab, B, M, Ks, mlps):
    """x_comb: (G*sum(Ks), C_pad) bf16 stacked grouped features.
    Returns (B, M, sum_s C_out_s) f32."""
    G = B * M
    L, _, C_pad = w_slab.shape
    out_offsets, off = [], 0
    for m in mlps:
        out_offsets.append(off)
        off += m[-1]
    c_total = off

    out = pl.pallas_call(
        _make_fused_msg_kernel(G, tuple(Ks), L, tuple(out_offsets), C_pad),
        out_shape=jax.ShapeDtypeStruct((G, C_pad), jnp.float32),
        compiler_params=pltpu.CompilerParams(vmem_limit_bytes=32 * 1024 * 1024),
    )(x_comb, w_slab, b_slab)
    # Lane-dense kernel output -> slice off the padding lanes (cheap XLA).
    return out[:, :c_total].reshape(B, M, c_total)


# -----------------------------------------------------------------------------
# Plain-JAX glue: FPS, gather, ball query (data-dependent indexing)
# -----------------------------------------------------------------------------
def fps(xyz, M):
    """Farthest point sampling (deterministic start at index 0)."""
    B, N, _ = xyz.shape

    def per_batch(pts):
        def body(i, state):
            centroids, dists, farthest = state
            centroids = centroids.at[i].set(farthest)
            centroid = pts[farthest]
            d = jnp.sum((pts - centroid) ** 2, axis=-1)
            dists = jnp.minimum(dists, d)
            farthest = jnp.argmax(dists).astype(jnp.int32)
            return centroids, dists, farthest

        init = (jnp.zeros((M,), jnp.int32),
                jnp.full((N,), 1e10, jnp.float32),
                jnp.int32(0))
        centroids, _, _ = lax.fori_loop(0, M, body, init)
        return centroids

    return jax.vmap(per_batch)(xyz)


def gather_points(points, inds):
    # points: (B, N, C); inds: (B, M) or (B, M, K)
    return jax.vmap(lambda p, i: p[i])(points, inds)


def ball_query(xyz, new_xyz, radius, K):
    """First-K-in-radius neighbour indices; empty slots padded with first hit.
    Note: a centroid with zero in-radius points cannot occur when new_xyz is a
    subset of xyz (self-distance 0)."""
    B, N, _ = xyz.shape
    sqd = jnp.sum((new_xyz[:, :, None, :] - xyz[:, None, :, :]) ** 2, axis=-1)  # (B,M,N)
    idx = jnp.broadcast_to(jnp.arange(N, dtype=jnp.int32), sqd.shape)
    idx = jnp.where(sqd > radius * radius, N, idx)
    neg_topk, _ = lax.top_k(-idx, K)          # K smallest indices, O(N*K)
    idx = -neg_topk
    first = idx[:, :, 0:1]
    idx = jnp.where(idx == N, first, idx)
    return idx


# -----------------------------------------------------------------------------
# Module forward
# -----------------------------------------------------------------------------
def pointnet_sa_module_msg(xyz, points, w_slab, b_slab, M, radiuses, Ks, mlps,
                           use_xyz=True):
    B = xyz.shape[0]
    C_pad = w_slab.shape[-1]
    new_xyz = gather_points(xyz, fps(xyz, M))                      # (B, M, 3)

    # Build the combined block-diagonal input: rows of all scales stacked,
    # scale-s channels at column offset = sum of previous scales' C_in.
    xs, col = [], 0
    for i in range(len(Ks)):
        radius, K = radiuses[i], Ks[i]
        gi = ball_query(xyz, new_xyz, radius, K)                   # (B, M, K)
        gxyz = gather_points(xyz, gi) - new_xyz[:, :, None, :]     # (B, M, K, 3)
        if points is not None:
            gp = gather_points(points, gi)                         # (B, M, K, C_feat)
            grouped = jnp.concatenate([gxyz, gp], axis=-1) if use_xyz else gp
        else:
            grouped = gxyz
        c_in = grouped.shape[-1]
        g2 = grouped.reshape(B * M * K, c_in)                      # contiguous reshape
        xs.append(jnp.pad(g2, ((0, 0), (col, C_pad - col - c_in))))
        col += c_in
    x_comb = jnp.concatenate(xs, axis=0).astype(jnp.bfloat16)      # (R, C_pad) bf16

    new_points = msg_mlp_pool_fused(x_comb, w_slab, b_slab, B, M, Ks, mlps)
    return new_xyz, new_points


# -----------------------------------------------------------------------------
# Parameters: Conv2d 1x1 weights with eval-mode BatchNorm folded into the
# weight (scale) + a bias; packed into block-diagonal 128-lane-padded slabs.
# -----------------------------------------------------------------------------
def init_params(key, in_channels, mlps):
    """Deterministic synthetic params, BN (eval, running_mean=0, running_var=1)
    folded into the conv weight.  Returns params[s][l] = (w f32, bias f32)."""
    params = []
    for mlp in mlps:
        layer_params = []
        c_in = in_channels
        for c_out in mlp:
            key, k1, k2, k3 = jax.random.split(key, 4)
            w = jax.random.normal(k1, (c_in, c_out), jnp.float32) / jnp.sqrt(c_in)
            gamma = 1.0 + 0.1 * jax.random.normal(k2, (c_out,), jnp.float32)
            beta = 0.1 * jax.random.normal(k3, (c_out,), jnp.float32)
            scale = gamma / jnp.sqrt(1.0 + 1e-5)
            layer_params.append((w * scale, beta))
            c_in = c_out
        params.append(layer_params)
    return params


def pack_msg_params(params, in_channels, mlps):
    """Pack per-scale per-layer (w, bias) into block-diagonal slabs:
    w_slab (L, C_pad, C_pad) bf16 and b_slab (L, 1, C_pad) f32."""
    n_scales = len(mlps)
    L = len(mlps[0])
    # TODO(synk): ragged layer counts across scales need a per-scale fallback.
    assert all(len(m) == L for m in mlps), "block-diag fusion needs equal depth"

    need = 0
    for l in range(L):
        cin_tot = sum((in_channels if l == 0 else mlps[s][l - 1])
                      for s in range(n_scales))
        cout_tot = sum(mlps[s][l] for s in range(n_scales))
        need = max(need, cin_tot, cout_tot)
    C_pad = max(128, ((need + 127) // 128) * 128)     # lane-dense width

    w_slab = jnp.zeros((L, C_pad, C_pad), jnp.float32)
    b_slab = jnp.zeros((L, 1, C_pad), jnp.float32)
    for l in range(L):
        rin, rout = 0, 0
        for s in range(n_scales):
            w, b = params[s][l]
            ci, co = w.shape
            w_slab = w_slab.at[l, rin:rin + ci, rout:rout + co].set(w)
            b_slab = b_slab.at[l, 0, rout:rout + co].set(b)
            rin += ci
            rout += co
    return w_slab.astype(jnp.bfloat16), b_slab


if __name__ == "__main__":
    key = jax.random.PRNGKey(0)
    B, N, C_feat = 2, 64, 5
    M = 8
    radiuses = [0.2, 0.4]
    Ks = [8, 16]
    mlps = [[16, 16, 32], [16, 16, 32]]
    in_channels = 3 + C_feat                      # use_xyz=True

    k_xyz, k_pts, k_prm = jax.random.split(key, 3)
    xyz = jax.random.uniform(k_xyz, (B, N, 3), jnp.float32)
    points = jax.random.normal(k_pts, (B, N, C_feat), jnp.float32)
    w_slab, b_slab = pack_msg_params(init_params(k_prm, in_channels, mlps),
                                     in_channels, mlps)

    fwd = jax.jit(functools.partial(
        pointnet_sa_module_msg, M=M, radiuses=radiuses, Ks=Ks, mlps=mlps,
        use_xyz=True))
    new_xyz, new_points = fwd(xyz, points, w_slab, b_slab)
    jax.block_until_ready((new_xyz, new_points))

    assert new_xyz.shape == (B, M, 3)
    assert new_points.shape == (B, M, sum(m[-1] for m in mlps))
    assert bool(jnp.all(jnp.isfinite(new_points)))
    print("KERNEL_OK")
</pallas_src>

<mosaic_0001>
module attributes {stable_mosaic.version = 11 : i64} {
  func.func @kernel(%arg0: memref<384x128xbf16, #tpu.memory_space<vmem>>, %arg1: memref<3x128x128xbf16, #tpu.memory_space<vmem>>, %arg2: memref<3x1x128xf32, #tpu.memory_space<vmem>>, %arg3: memref<16x128xf32, #tpu.memory_space<vmem>>) attributes {dimension_semantics = [], scalar_prefetch = 0 : i64, scratch_operands = 0 : i64, tpu.core_type = #tpu.core_type<tc>} {
    %c0 = arith.constant 0 : index
    %c0_0 = arith.constant 0 : index
    %0 = vector.load %arg0[%c0, %c0_0] : memref<384x128xbf16, #tpu.memory_space<vmem>>, vector<384x128xbf16>
    %c0_1 = arith.constant 0 : index
    %c0_2 = arith.constant 0 : index
    %c0_3 = arith.constant 0 : index
    %1 = vector.load %arg1[%c0_1, %c0_2, %c0_3] : memref<3x128x128xbf16, #tpu.memory_space<vmem>>, vector<1x128x128xbf16>
    %2 = vector.shape_cast %1 : vector<1x128x128xbf16> to vector<128x128xbf16>
    %cst = arith.constant dense<0.000000e+00> : vector<384x128xf32>
    %3 = tpu.matmul %0, %2, %cst {dimension_numbers = #tpu.dot_dimension_numbers<[1], [0], [0], [1], [0, 0, 1, 1], [], []>} : vector<384x128xbf16>, vector<128x128xbf16>, vector<384x128xf32> -> vector<384x128xf32>
    %c0_4 = arith.constant 0 : index
    %c0_5 = arith.constant 0 : index
    %c0_6 = arith.constant 0 : index
    %4 = vector.load %arg2[%c0_4, %c0_5, %c0_6] : memref<3x1x128xf32, #tpu.memory_space<vmem>>, vector<1x1x128xf32>
    %5 = vector.shape_cast %4 : vector<1x1x128xf32> to vector<1x128xf32>
    %6 = vector.broadcast %5 : vector<1x128xf32> to vector<384x128xf32>
    %7 = arith.addf %3, %6 : vector<384x128xf32>
    %cst_7 = arith.constant 0.000000e+00 : f32
    %8 = vector.broadcast %cst_7 : f32 to vector<384x128xf32>
    %9 = arith.maximumf %7, %8 : vector<384x128xf32>
    %10 = arith.truncf %9 : vector<384x128xf32> to vector<384x128xbf16>
    %c1 = arith.constant 1 : index
    %c0_8 = arith.constant 0 : index
    %c0_9 = arith.constant 0 : index
    %11 = vector.load %arg1[%c1, %c0_8, %c0_9] : memref<3x128x128xbf16, #tpu.memory_space<vmem>>, vector<1x128x128xbf16>
    %12 = vector.shape_cast %11 : vector<1x128x128xbf16> to vector<128x128xbf16>
    %cst_10 = arith.constant dense<0.000000e+00> : vector<384x128xf32>
    %13 = tpu.matmul %10, %12, %cst_10 {dimension_numbers = #tpu.dot_dimension_numbers<[1], [0], [0], [1], [0, 0, 1, 1], [], []>} : vector<384x128xbf16>, vector<128x128xbf16>, vector<384x128xf32> -> vector<384x128xf32>
    %c1_11 = arith.constant 1 : index
    %c0_12 = arith.constant 0 : index
    %c0_13 = arith.constant 0 : index
    %14 = vector.load %arg2[%c1_11, %c0_12, %c0_13] : memref<3x1x128xf32, #tpu.memory_space<vmem>>, vector<1x1x128xf32>
    %15 = vector.shape_cast %14 : vector<1x1x128xf32> to vector<1x128xf32>
    %16 = vector.broadcast %15 : vector<1x128xf32> to vector<384x128xf32>
    %17 = arith.addf %13, %16 : vector<384x128xf32>
    %cst_14 = arith.constant 0.000000e+00 : f32
    %18 = vector.broadcast %cst_14 : f32 to vector<384x128xf32>
    %19 = arith.maximumf %17, %18 : vector<384x128xf32>
    %20 = arith.truncf %19 : vector<384x128xf32> to vector<384x128xbf16>
    %c2 = arith.constant 2 : index
    %c0_15 = arith.constant 0 : index
    %c0_16 = arith.constant 0 : index
    %21 = vector.load %arg1[%c2, %c0_15, %c0_16] : memref<3x128x128xbf16, #tpu.memory_space<vmem>>, vector<1x128x128xbf16>
    %22 = vector.shape_cast %21 : vector<1x128x128xbf16> to vector<128x128xbf16>
    %cst_17 = arith.constant dense<0.000000e+00> : vector<384x128xf32>
    %23 = tpu.matmul %20, %22, %cst_17 {dimension_numbers = #tpu.dot_dimension_numbers<[1], [0], [0], [1], [0, 0, 1, 1], [], []>} : vector<384x128xbf16>, vector<128x128xbf16>, vector<384x128xf32> -> vector<384x128xf32>
    %c2_18 = arith.constant 2 : index
    %c0_19 = arith.constant 0 : index
    %c0_20 = arith.constant 0 : index
    %24 = vector.load %arg2[%c2_18, %c0_19, %c0_20] : memref<3x1x128xf32, #tpu.memory_space<vmem>>, vector<1x1x128xf32>
    %25 = vector.shape_cast %24 : vector<1x1x128xf32> to vector<1x128xf32>
    %26 = vector.broadcast %25 : vector<1x128xf32> to vector<384x128xf32>
    %27 = arith.addf %23, %26 : vector<384x128xf32>
    %cst_21 = arith.constant 0.000000e+00 : f32
    %28 = vector.broadcast %cst_21 : f32 to vector<384x128xf32>
    %29 = arith.maximumf %27, %28 : vector<384x128xf32>
    %30 = tpu.iota {dimensions = array<i32: 1>} : vector<16x128xi32>
    %31 = vector.extract_strided_slice %29 {offsets = [0, 0], sizes = [128, 128], strides = [1, 1]} : vector<384x128xf32> to vector<128x128xf32>
    %32 = vector.shape_cast %31 : vector<128x128xf32> to vector<16x8x128xf32>
    %cst_22 = arith.constant dense<0xFF800000> : vector<16x128xf32>
    %33 = vector.multi_reduction <maximumf>, %32, %cst_22 [1] : vector<16x8x128xf32> to vector<16x128xf32>
    %34 = vector.extract_strided_slice %29 {offsets = [128, 0], sizes = [256, 128], strides = [1, 1]} : vector<384x128xf32> to vector<256x128xf32>
    %35 = vector.shape_cast %34 : vector<256x128xf32> to vector<16x16x128xf32>
    %cst_23 = arith.constant dense<0xFF800000> : vector<16x128xf32>
    %36 = vector.multi_reduction <maximumf>, %35, %cst_23 [1] : vector<16x16x128xf32> to vector<16x128xf32>
    %c32_i32 = arith.constant 32 : i32
    %37 = vector.broadcast %c32_i32 : i32 to vector<16x128xi32>
    %38 = arith.cmpi slt, %30, %37 : vector<16x128xi32>
    %39 = arith.select %38, %33, %36 : vector<16x128xi1>, vector<16x128xf32>
    %c0_24 = arith.constant 0 : index
    %c0_25 = arith.constant 0 : index
    %40 = vector.load %arg3[%c0_24, %c0_25] : memref<16x128xf32, #tpu.memory_space<vmem>>, vector<16x128xf32>
    tpu.vector_store %arg3[%c0_24, %c0_25], %39 {strides = array<i32>} : memref<16x128xf32, #tpu.memory_space<vmem>>, vector<16x128xf32>,
    return
  }
}

</mosaic_0001>

<bundles_post_ra>
// kernel: custom-call.12
= control target key start
LH: loop header
LB: loop body
LE: loop exit
PB: predicated region body
PF: predicated region fallthrough
CT: control target
= control target key end

     0   :  { %s6_s0 = inlined_call_operand.vmem [shape: f32[2,64], index: 0, kind: output, shape index: {}]  }

// kernel: pointnet_sa_module_msg.1
= control target key start
LH: loop header
LB: loop body
LE: loop exit
PB: predicated region body
PF: predicated region fallthrough
CT: control target
= control target key end

     0   :  { %vm1220_vm0 = vcmask 1041409   ;;  %vm1222_vm1 = vcmask 1042434   ;;  %vm1224_vm2 = vcmask 1043459   ;;  %vm1226_vm3 = vcmask 1044484   ;;  %s1976_s1 = inlined_call_operand.vmem [shape: bf16[3,128,128], index: 1, kind: input, shape index: {}]   ;;  %s1977_s2 = inlined_call_operand.vmem [shape: f32[3,1,128], index: 2, kind: input, shape index: {}]   ;;  %s1978_s0 = inlined_call_operand.vmem [shape: bf16[384,128], index: 0, kind: input, shape index: {}]   ;;  %s1979_s3 = inlined_call_operand.vmem [shape: f32[16,128], index: 3, kind: output, shape index: {}]  }
   0x1   :  { %v1540_v0 = vld [vmem:[%s1976_s1 + $0x38] sm:$0xff]  ;;  %v1539_v1 = vld [vmem:[%s1976_s1 + $0x30] sm:$0xff]  ;;  %v1538_v2 = vld [vmem:[%s1976_s1 + $0x28] sm:$0xff]  ;;  %vm1228_vm4 = vcmask 1045509   ;;  %vm1230_vm5 = vcmask 1046534   ;;  %vm1232_vm6 = vcmask 1047559  }
   0x2   :  { %274 = vmatpush.bf16.msra.mxu0 %v1540_v0  ;;  %1557 = vmatpush.bf16.msra.mxu3 %v1540_v0  ;;  %v1537_v3 = vld [vmem:[%s1976_s1 + $0x20] sm:$0xff]  ;;  %v1536_v4 = vld [vmem:[%s1976_s1 + $0x18] sm:$0xff]  ;;  %v1535_v5 = vld [vmem:[%s1976_s1 + $0x10] sm:$0xff] }
   0x3   :  { %v1534_v6 = vld [vmem:[%s1976_s1 + $0x8] sm:$0xff]  ;;  %v1533_v7 = vld [vmem:[%s1976_s1] sm:$0xff]  ;;  %v1511_v10 = vld [vmem:[%s1978_s0 + $0x10] sm:$0xff] }
   0x4   :  { %v1509_v8 = vld [vmem:[%s1978_s0] sm:$0xff]  ;;  %v1510_v9 = vld [vmem:[%s1978_s0 + $0x8] sm:$0xff]  ;;  %v1512_v11 = vld [vmem:[%s1978_s0 + $0x18] sm:$0xff] }
   0x5   :  { %v1513_v12 = vld [vmem:[%s1978_s0 + $0x20] sm:$0xff]  ;;  %v1548_v13 = vld [vmem:[%s1976_s1 + $0x78] sm:$0xff]  ;;  %v1514_v14 = vld [vmem:[%s1978_s0 + $0x28] sm:$0xff] }
   0x6   :  { %275 = vmatpush.bf16.msra.mxu0 %v1539_v1  ;;  %1558 = vmatpush.bf16.msra.mxu3 %v1539_v1  ;;  %v1547_v15 = vld [vmem:[%s1976_s1 + $0x70] sm:$0xff]  ;;  %v1546_v16 = vld [vmem:[%s1976_s1 + $0x68] sm:$0xff]  ;;  %v1545_v17 = vld [vmem:[%s1976_s1 + $0x60] sm:$0xff] }
   0x7   :  { %545 = vmatpush.bf16.msra.mxu1 %v1548_v13  ;;  %v1544_v18 = vld [vmem:[%s1976_s1 + $0x58] sm:$0xff]  ;;  %v1515_v19 = vld [vmem:[%s1978_s0 + $0x30] sm:$0xff]  ;;  %v1542_v21 = vld [vmem:[%s1976_s1 + $0x48] sm:$0xff] }
   0x8   :  { %v1543_v20 = vld [vmem:[%s1976_s1 + $0x50] sm:$0xff]  ;;  %v1541_v22 = vld [vmem:[%s1976_s1 + $0x40] sm:$0xff]  ;;  %v1516_v23 = vld [vmem:[%s1978_s0 + $0x38] sm:$0xff] }
   0x9   :  { %v1527_v24 = vld [vmem:[%s1978_s0 + $0x90] sm:$0xff]  ;;  %v1517_v25 = vld [vmem:[%s1978_s0 + $0x40] sm:$0xff]  ;;  %v1528_v33 = vld [vmem:[%s1978_s0 + $0x98] sm:$0xff] }
   0xa   :  { %276 = vmatpush.bf16.msra.mxu0 %v1538_v2  ;;  %1559 = vmatpush.bf16.msra.mxu3 %v1538_v2  ;;  %v1685_v27 = vld [vmem:[%s1977_s2] ss:$0 sm:$0xff]  ;;  %v1518_v35 = vld [vmem:[%s1978_s0 + $0x48] sm:$0xff]  ;;  %v1519_v44 = vld [vmem:[%s1978_s0 + $0x50] sm:$0xff] }
   0xb   :  { %546 = vmatpush.bf16.msra.mxu1 %v1547_v15  ;;  %v1529_v42 = vld [vmem:[%s1978_s0 + $0xa0] sm:$0xff]  ;;  %v1530_v51 = vld [vmem:[%s1978_s0 + $0xa8] sm:$0xff]  ;;  %v1520_v53 = vld [vmem:[%s1978_s0 + $0x58] sm:$0xff] }
   0xc   :  { %v1531_v60 = vld [vmem:[%s1978_s0 + $0xb0] sm:$0xff]  ;;  %v1521_v62 = vld [vmem:[%s1978_s0 + $0x60] sm:$0xff] }
   0xe   :  { %277 = vmatpush.bf16.msra.mxu0 %v1537_v3  ;;  %1560 = vmatpush.bf16.msra.mxu3 %v1537_v3 }
   0xf   :  { %547 = vmatpush.bf16.msra.mxu1 %v1546_v16 }
  0x12   :  { %278 = vmatpush.bf16.msra.mxu0 %v1536_v4  ;;  %1561 = vmatpush.bf16.msra.mxu3 %v1536_v4 }
  0x13   :  { %548 = vmatpush.bf16.msra.mxu1 %v1545_v17 }
  0x16   :  { %279 = vmatpush.bf16.msra.mxu0 %v1535_v5  ;;  %1562 = vmatpush.bf16.msra.mxu3 %v1535_v5  ;;  %v1532_v5 = vld [vmem:[%s1978_s0 + $0xb8] sm:$0xff] }
  0x17   :  { %549 = vmatpush.bf16.msra.mxu1 %v1544_v18 }
  0x1a   :  { %280 = vmatpush.bf16.msra.mxu0 %v1534_v6  ;;  %1563 = vmatpush.bf16.msra.mxu3 %v1534_v6 }
  0x1b   :  { %550 = vmatpush.bf16.msra.mxu1 %v1543_v20 }
  0x1e   :  { %281 = vmatpush.bf16.msra.mxu0 %v1533_v7  ;;  %1564 = vmatpush.bf16.msra.mxu3 %v1533_v7  ;;  %v1522_v7 = vld [vmem:[%s1978_s0 + $0x68] sm:$0xff] }
  0x1f   :  { %551 = vmatpush.bf16.msra.mxu1 %v1542_v21 }
  0x21   :  { %282 = vmatmul.bf16.vlgmr.msra.gmra.mxu0 %v1509_v8  ;;  %372 = vmatmul.bf16.vlgmr.msra.gmra.mxu3 %v1527_v24  ;;  %v1552_v24 = vld [vmem:[%s1976_s1 + $0x98] sm:$0xff] }
  0x22   :  { %1565 = vmatpush.bf16.msrb.mxu3 %v1548_v13 }
  0x23   :  { %552 = vmatpush.bf16.msra.mxu1 %v1541_v22 }
  0x26   :  { %1566 = vmatpush.bf16.msrb.mxu3 %v1547_v15 }
  0x2a   :  { %1567 = vmatpush.bf16.msrb.mxu3 %v1546_v16  ;;  %v1555_v16 = vld [vmem:[%s1976_s1 + $0xb0] sm:$0xff] }
  0x2e   :  { %1568 = vmatpush.bf16.msrb.mxu3 %v1545_v17  ;;  %v1523_v17 = vld [vmem:[%s1978_s0 + $0x70] sm:$0xff] }
  0x31   :  { %287 = vmatmul.bf16.gmra.mxu0 %v1510_v9  ;;  %377 = vmatmul.bf16.gmra.mxu3 %v1528_v33  ;;  %v1549_v33 = vld [vmem:[%s1976_s1 + $0x80] sm:$0xff] }
  0x32   :  { %1569 = vmatpush.bf16.msrb.mxu3 %v1544_v18 }
  0x36   :  { %1570 = vmatpush.bf16.msrb.mxu3 %v1543_v20  ;;  %v1553_v20 = vld [vmem:[%s1976_s1 + $0xa0] sm:$0xff] }
  0x3a   :  { %1571 = vmatpush.bf16.msrb.mxu3 %v1542_v21 }
  0x3e   :  { %1572 = vmatpush.bf16.msrb.mxu3 %v1541_v22 }
  0x41   :  { %292 = vmatmul.bf16.gmra.mxu0 %v1511_v10  ;;  %382 = vmatmul.bf16.gmra.mxu3 %v1529_v42 }
  0x51   :  { %297 = vmatmul.bf16.gmra.mxu0 %v1512_v11  ;;  %387 = vmatmul.bf16.gmra.mxu3 %v1530_v51 }
  0x61   :  { %302 = vmatmul.bf16.gmra.mxu0 %v1513_v12  ;;  %392 = vmatmul.bf16.gmra.mxu3 %v1531_v60  ;;  %v1556_v12 = vld [vmem:[%s1976_s1 + $0xb8] sm:$0xff] }
  0x62   :  { %816 = vmatpush.bf16.msra.mxu2 %v1556_v12  ;;  %1573 = vmatpush.bf16.msra.mxu3 %v1556_v12 }
  0x66   :  { %817 = vmatpush.bf16.msra.mxu2 %v1555_v16  ;;  %1574 = vmatpush.bf16.msra.mxu3 %v1555_v16 }
  0x71   :  { %307 = vmatmul.bf16.gmra.mxu0 %v1514_v14  ;;  %397 = vmatmul.bf16.gmra.mxu3 %v1532_v5 }
  0x81   :  { %312 = vmatmul.bf16.gmra.mxu0 %v1515_v19  ;;  %v1554_v19 = vld [vmem:[%s1976_s1 + $0xa8] sm:$0xff] }
  0x82   :  { %818 = vmatpush.bf16.msra.mxu2 %v1554_v19  ;;  %1575 = vmatpush.bf16.msra.mxu3 %v1554_v19 }
  0x86   :  { %819 = vmatpush.bf16.msra.mxu2 %v1553_v20  ;;  %1576 = vmatpush.bf16.msra.mxu3 %v1553_v20 }
  0x8a   :  { %820 = vmatpush.bf16.msra.mxu2 %v1552_v24  ;;  %1577 = vmatpush.bf16.msra.mxu3 %v1552_v24 }
  0x91   :  { %317 = vmatmul.bf16.gmra.mxu0 %v1516_v23 }
  0x9e   :  { %v283_v26 = vpop.f32.mrf.mxu0 }
  0x9f   :  { %v284_v28 = vadd.f32 %v1685_v27, %v283_v26 }
  0xa1   :  { %322 = vmatmul.bf16.gmra.mxu0 %v1517_v25  ;;  %v403_v31 = vmax.f32 %v284_v28, 0.0 }
  0xa4   :  { %v373_v42 = vpop.f32.mrf.mxu3 }
  0xa6   :  { %v285_v29 = vpop.f32.mrf.mxu0 }
  0xa7   :  { %v286_v30 = vadd.f32 %v1685_v27, %v285_v29  ;;  %v1551_v29 = vld [vmem:[%s1976_s1 + $0x90] sm:$0xff] }
  0xa8   :  { %821 = vmatpush.bf16.msra.mxu2 %v1551_v29  ;;  %1578 = vmatpush.bf16.msra.mxu3 %v1551_v29 }
  0xa9   :  { %v404_v32 = vmax.f32 %v286_v30, 0.0  ;;  %v1524_v30 = vld [vmem:[%s1978_s0 + $0x78] sm:$0xff] }
  0xab   :  { %v451_v34 = vpack.c.bf16 %v404_v32, %v403_v31  ;;  %v1550_v32 = vld [vmem:[%s1976_s1 + $0x88] sm:$0xff] }
  0xac   :  { %822 = vmatpush.bf16.msra.mxu2 %v1550_v32  ;;  %1579 = vmatpush.bf16.msra.mxu3 %v1550_v32 }
  0xad   :  { %553 = vmatmul.bf16.vlgmr.msra.gmra.mxu1 %v451_v34 }
  0xae   :  { %v288_v36 = vpop.f32.mrf.mxu0 }
  0xaf   :  { %v289_v37 = vadd.f32 %v1685_v27, %v288_v36 }
  0xb0   :  { %823 = vmatpush.bf16.msra.mxu2 %v1549_v33  ;;  %1580 = vmatpush.bf16.msra.mxu3 %v1549_v33 }
  0xb1   :  { %327 = vmatmul.bf16.gmra.mxu0 %v1518_v35  ;;  %v405_v40 = vmax.f32 %v289_v37, 0.0 }
  0xb6   :  { %v290_v38 = vpop.f32.mrf.mxu0 }
  0xb7   :  { %v291_v39 = vadd.f32 %v1685_v27, %v290_v38 }
  0xb9   :  { %v406_v41 = vmax.f32 %v291_v39, 0.0 }
  0xbb   :  { %v452_v43 = vpack.c.bf16 %v406_v41, %v405_v40  ;;  %v1525_v40 = vld [vmem:[%s1978_s0 + $0x80] sm:$0xff] }
  0xbd   :  { %558 = vmatmul.bf16.gmra.mxu1 %v452_v43 }
  0xbe   :  { %v293_v45 = vpop.f32.mrf.mxu0 }
  0xbf   :  { %v294_v46 = vadd.f32 %v1685_v27, %v293_v45 }
  0xc1   :  { %332 = vmatmul.bf16.gmra.mxu0 %v1519_v44  ;;  %v407_v49 = vmax.f32 %v294_v46, 0.0  ;;  %v374_v44 = vadd.f32 %v1685_v27, %v373_v42 }
  0xc6   :  { %v295_v47 = vpop.f32.mrf.mxu0 }
  0xc7   :  { %v296_v48 = vadd.f32 %v1685_v27, %v295_v47  ;;  %v375_v47 = vpop.f32.mrf.mxu3 }
  0xc8   :  { %v376_v51 = vadd.f32 %v1685_v27, %v375_v47 }
  0xc9   :  { %v408_v50 = vmax.f32 %v296_v48, 0.0 }
  0xcb   :  { %v453_v52 = vpack.c.bf16 %v408_v50, %v407_v49  ;;  %v439_v50 = vmax.f32 %v374_v44, 0.0 }
  0xcd   :  { %563 = vmatmul.bf16.gmra.mxu1 %v453_v52 }
  0xce   :  { %v298_v54 = vpop.f32.mrf.mxu0 }
  0xcf   :  { %v299_v55 = vadd.f32 %v1685_v27, %v298_v54  ;;  %v440_v54 = vmax.f32 %v376_v51, 0.0 }
  0xd1   :  { %337 = vmatmul.bf16.gmra.mxu0 %v1520_v53  ;;  %v409_v58 = vmax.f32 %v299_v55, 0.0  ;;  %v1773_v55 = vld [vmem:[%s1977_s2 + $0x1] ss:$0 sm:$0xff] }
  0xd6   :  { %v300_v56 = vpop.f32.mrf.mxu0 }
  0xd7   :  { %v301_v57 = vadd.f32 %v1685_v27, %v300_v56  ;;  %v1526_v56 = vld [vmem:[%s1978_s0 + $0x88] sm:$0xff] }
  0xd9   :  { %v410_v59 = vmax.f32 %v301_v57, 0.0  ;;  %v469_v57 = vpack.c.bf16 %v440_v54, %v439_v50 }
  0xdb   :  { %v454_v61 = vpack.c.bf16 %v410_v59, %v409_v58  ;;  %643 = vmatmul.bf16.vlgmr.msrb.gmra.mxu3 %v469_v57  ;;  %v378_v59 = vpop.f32.mrf.mxu3 }
  0xdd   :  { %568 = vmatmul.bf16.gmra.mxu1 %v454_v61 }
  0xde   :  { %v303_v63 = vpop.f32.mrf.mxu0 }
  0xdf   :  { %v304_v0 = vadd.f32 %v1685_v27, %v303_v63 }
  0xe1   :  { %342 = vmatmul.bf16.gmra.mxu0 %v1521_v62  ;;  %v411_v3 = vmax.f32 %v304_v0, 0.0 }
  0xe6   :  { %v305_v1 = vpop.f32.mrf.mxu0 }
  0xe7   :  { %v306_v2 = vadd.f32 %v1685_v27, %v305_v1 }
  0xe9   :  { %v412_v4 = vmax.f32 %v306_v2, 0.0  ;;  %v379_v2 = vadd.f32 %v1685_v27, %v378_v59 }
  0xeb   :  { %v455_v6 = vpack.c.bf16 %v412_v4, %v411_v3 }
  0xed   :  { %573 = vmatmul.bf16.gmra.mxu1 %v455_v6  ;;  %v380_v6 = vpop.f32.mrf.mxu3 }
  0xee   :  { %v308_v8 = vpop.f32.mrf.mxu0 }
  0xef   :  { %v309_v9 = vadd.f32 %v1685_v27, %v308_v8 }
  0xf1   :  { %347 = vmatmul.bf16.gmra.mxu0 %v1522_v7  ;;  %v413_v13 = vmax.f32 %v309_v9, 0.0  ;;  %v441_v9 = vmax.f32 %v379_v2, 0.0 }
  0xf5   :  { %v383_v16 = vpop.f32.mrf.mxu3 }
  0xf6   :  { %v310_v10 = vpop.f32.mrf.mxu0 }
  0xf7   :  { %v311_v11 = vadd.f32 %v1685_v27, %v310_v10  ;;  %v381_v10 = vadd.f32 %v1685_v27, %v380_v6 }
  0xf9   :  { %v414_v14 = vmax.f32 %v311_v11, 0.0 }
  0xfb   :  { %v456_v15 = vpack.c.bf16 %v414_v14, %v413_v13  ;;  %v442_v13 = vmax.f32 %v381_v10, 0.0 }
  0xfd   :  { %578 = vmatmul.bf16.gmra.mxu1 %v456_v15  ;;  %v470_v14 = vpack.c.bf16 %v442_v13, %v441_v9 }
  0xfe   :  { %v313_v18 = vpop.f32.mrf.mxu0 }
  0xff   :  { %v314_v21 = vadd.f32 %v1685_v27, %v313_v18  ;;  %648 = vmatmul.bf16.gmra.mxu3 %v470_v14 }
 0x101   :  { %352 = vmatmul.bf16.gmra.mxu0 %v1523_v17  ;;  %v415_v25 = vmax.f32 %v314_v21, 0.0 }
 0x106   :  { %v315_v22 = vpop.f32.mrf.mxu0 }
 0x107   :  { %v316_v23 = vadd.f32 %v1685_v27, %v315_v22 }
 0x109   :  { %v416_v26 = vmax.f32 %v316_v23, 0.0  ;;  %v384_v23 = vadd.f32 %v1685_v27, %v383_v16 }
 0x10b   :  { %v457_v28 = vpack.c.bf16 %v416_v26, %v415_v25 }
 0x10d   :  { %583 = vmatmul.bf16.gmra.mxu1 %v457_v28  ;;  %v385_v28 = vpop.f32.mrf.mxu3 }
 0x10e   :  { %v318_v31 = vpop.f32.mrf.mxu0  ;;  %v386_v32 = vadd.f32 %v1685_v27, %v385_v28 }
 0x10f   :  { %v319_v34 = vadd.f32 %v1685_v27, %v318_v31  ;;  %v443_v31 = vmax.f32 %v384_v23, 0.0 }
 0x111   :  { %357 = vmatmul.bf16.gmra.mxu0 %v1524_v30  ;;  %v417_v37 = vmax.f32 %v319_v34, 0.0 }
 0x116   :  { %v320_v35 = vpop.f32.mrf.mxu0 }
 0x117   :  { %v321_v36 = vadd.f32 %v1685_v27, %v320_v35  ;;  %v444_v35 = vmax.f32 %v386_v32, 0.0 }
 0x119   :  { %v418_v38 = vmax.f32 %v321_v36, 0.0  ;;  %v471_v36 = vpack.c.bf16 %v444_v35, %v443_v31 }
 0x11b   :  { %v458_v39 = vpack.c.bf16 %v418_v38, %v417_v37  ;;  %653 = vmatmul.bf16.gmra.mxu3 %v471_v36  ;;  %v388_v38 = vpop.f32.mrf.mxu3 }
 0x11d   :  { %588 = vmatmul.bf16.gmra.mxu1 %v458_v39 }
 0x11e   :  { %v323_v41 = vpop.f32.mrf.mxu0 }
 0x11f   :  { %v324_v43 = vadd.f32 %v1685_v27, %v323_v41 }
 0x121   :  { %362 = vmatmul.bf16.gmra.mxu0 %v1525_v40  ;;  %v419_v48 = vmax.f32 %v324_v43, 0.0 }
 0x126   :  { %v325_v45 = vpop.f32.mrf.mxu0 }
 0x127   :  { %v326_v46 = vadd.f32 %v1685_v27, %v325_v45  ;;  %v389_v45 = vadd.f32 %v1685_v27, %v388_v38 }
 0x129   :  { %v420_v49 = vmax.f32 %v326_v46, 0.0 }
 0x12a   :  { %v554_v52 = vpop.f32.mrf.mxu1 }
 0x12b   :  { %v459_v53 = vpack.c.bf16 %v420_v49, %v419_v48  ;;  %v555_v60 = vadd.f32 %v1773_v55, %v554_v52  ;;  %v390_v49 = vpop.f32.mrf.mxu3  ;;  %v445_v52 = vmax.f32 %v389_v45, 0.0 }
 0x12d   :  { %593 = vmatmul.bf16.gmra.mxu1 %v459_v53  ;;  %v674_v63 = vmax.f32 %v555_v60, 0.0  ;;  %v391_v53 = vadd.f32 %v1685_v27, %v390_v49 }
 0x12e   :  { %v328_v58 = vpop.f32.mrf.mxu0 }
 0x12f   :  { %v329_v0 = vadd.f32 %v1685_v27, %v328_v58  ;;  %v446_v57 = vmax.f32 %v391_v53, 0.0 }
 0x131   :  { %367 = vmatmul.bf16.gmra.mxu0 %v1526_v56  ;;  %v421_v7 = vmax.f32 %v329_v0, 0.0  ;;  %v472_v58 = vpack.c.bf16 %v446_v57, %v445_v52 }
 0x132   :  { %v556_v61 = vpop.f32.mrf.mxu1 }
 0x133   :  { %v557_v62 = vadd.f32 %v1773_v55, %v556_v61  ;;  %658 = vmatmul.bf16.gmra.mxu3 %v472_v58  ;;  %v393_v60 = vpop.f32.mrf.mxu3 }
 0x135   :  { %v675_v1 = vmax.f32 %v557_v62, 0.0 }
 0x136   :  { %v330_v3 = vpop.f32.mrf.mxu0 }
 0x137   :  { %v331_v4 = vadd.f32 %v1685_v27, %v330_v3  ;;  %v722_v5 = vpack.c.bf16 %v675_v1, %v674_v63  ;;  %v394_v3 = vadd.f32 %v1685_v27, %v393_v60 }
 0x139   :  { %v422_v8 = vmax.f32 %v331_v4, 0.0  ;;  %824 = vmatmul.bf16.vlgmr.msra.gmra.mxu2 %v722_v5  ;;  %v447_v10 = vmax.f32 %v394_v3, 0.0 }
 0x13a   :  { %v559_v11 = vpop.f32.mrf.mxu1 }
 0x13b   :  { %v460_v12 = vpack.c.bf16 %v422_v8, %v421_v7  ;;  %v560_v17 = vadd.f32 %v1773_v55, %v559_v11  ;;  %v395_v7 = vpop.f32.mrf.mxu3 }
 0x13c   :  { %v396_v11 = vadd.f32 %v1685_v27, %v395_v7 }
 0x13d   :  { %598 = vmatmul.bf16.gmra.mxu1 %v460_v12  ;;  %v676_v20 = vmax.f32 %v560_v17, 0.0 }
 0x13e   :  { %v333_v15 = vpop.f32.mrf.mxu0  ;;  %v448_v14 = vmax.f32 %v396_v11, 0.0 }
 0x13f   :  { %v334_v21 = vadd.f32 %v1685_v27, %v333_v15 }
 0x140   :  { %v473_v15 = vpack.c.bf16 %v448_v14, %v447_v10 }
 0x141   :  { %v423_v29 = vmax.f32 %v334_v21, 0.0 }
 0x142   :  { %v561_v18 = vpop.f32.mrf.mxu1 }
 0x143   :  { %v562_v19 = vadd.f32 %v1773_v55, %v561_v18  ;;  %663 = vmatmul.bf16.gmra.mxu3 %v473_v15  ;;  %v398_v17 = vpop.f32.mrf.mxu3 }
 0x145   :  { %v677_v22 = vmax.f32 %v562_v19, 0.0 }
 0x146   :  { %v335_v24 = vpop.f32.mrf.mxu0 }
 0x147   :  { %v336_v25 = vadd.f32 %v1685_v27, %v335_v24  ;;  %v723_v26 = vpack.c.bf16 %v677_v22, %v676_v20  ;;  %v399_v24 = vadd.f32 %v1685_v27, %v398_v17 }
 0x149   :  { %v424_v30 = vmax.f32 %v336_v25, 0.0  ;;  %829 = vmatmul.bf16.gmra.mxu2 %v723_v26  ;;  %v449_v32 = vmax.f32 %v399_v24, 0.0 }
 0x14a   :  { %v564_v33 = vpop.f32.mrf.mxu1 }
 0x14b   :  { %v461_v34 = vpack.c.bf16 %v424_v30, %v423_v29  ;;  %v565_v39 = vadd.f32 %v1773_v55, %v564_v33  ;;  %v400_v29 = vpop.f32.mrf.mxu3 }
 0x14c   :  { %v401_v33 = vadd.f32 %v1685_v27, %v400_v29 }
 0x14d   :  { %603 = vmatmul.bf16.gmra.mxu1 %v461_v34  ;;  %v678_v42 = vmax.f32 %v565_v39, 0.0 }
 0x14e   :  { %v338_v37 = vpop.f32.mrf.mxu0  ;;  %v450_v36 = vmax.f32 %v401_v33, 0.0 }
 0x14f   :  { %v339_v43 = vadd.f32 %v1685_v27, %v338_v37 }
 0x150   :  { %v474_v37 = vpack.c.bf16 %v450_v36, %v449_v32 }
 0x151   :  { %v425_v50 = vmax.f32 %v339_v43, 0.0 }
 0x152   :  { %v566_v40 = vpop.f32.mrf.mxu1 }
 0x153   :  { %v567_v41 = vadd.f32 %v1773_v55, %v566_v40  ;;  %668 = vmatmul.bf16.gmra.mxu3 %v474_v37 }
 0x155   :  { %v679_v44 = vmax.f32 %v567_v41, 0.0 }
 0x156   :  { %v340_v46 = vpop.f32.mrf.mxu0 }
 0x157   :  { %v341_v47 = vadd.f32 %v1685_v27, %v340_v46  ;;  %v724_v48 = vpack.c.bf16 %v679_v44, %v678_v42 }
 0x159   :  { %v426_v51 = vmax.f32 %v341_v47, 0.0  ;;  %834 = vmatmul.bf16.gmra.mxu2 %v724_v48 }
 0x15a   :  { %v569_v54 = vpop.f32.mrf.mxu1 }
 0x15b   :  { %v462_v56 = vpack.c.bf16 %v426_v51, %v425_v50  ;;  %v570_v61 = vadd.f32 %v1773_v55, %v569_v54 }
 0x15d   :  { %608 = vmatmul.bf16.gmra.mxu1 %v462_v56  ;;  %v680_v0 = vmax.f32 %v570_v61, 0.0 }
 0x15e   :  { %v343_v59 = vpop.f32.mrf.mxu0 }
 0x15f   :  { %v344_v1 = vadd.f32 %v1685_v27, %v343_v59 }
 0x161   :  { %v427_v8 = vmax.f32 %v344_v1, 0.0 }
 0x162   :  { %v571_v62 = vpop.f32.mrf.mxu1 }
 0x163   :  { %v572_v63 = vadd.f32 %v1773_v55, %v571_v62 }
 0x165   :  { %v681_v2 = vmax.f32 %v572_v63, 0.0 }
 0x166   :  { %v345_v4 = vpop.f32.mrf.mxu0 }
 0x167   :  { %v346_v5 = vadd.f32 %v1685_v27, %v345_v4  ;;  %v725_v6 = vpack.c.bf16 %v681_v2, %v680_v0 }
 0x169   :  { %v428_v9 = vmax.f32 %v346_v5, 0.0  ;;  %839 = vmatmul.bf16.gmra.mxu2 %v725_v6 }
 0x16a   :  { %v574_v12 = vpop.f32.mrf.mxu1 }
 0x16b   :  { %v463_v13 = vpack.c.bf16 %v428_v9, %v427_v8  ;;  %v575_v18 = vadd.f32 %v1773_v55, %v574_v12 }
 0x16d   :  { %613 = vmatmul.bf16.gmra.mxu1 %v463_v13  ;;  %v682_v21 = vmax.f32 %v575_v18, 0.0 }
 0x16e   :  { %v348_v16 = vpop.f32.mrf.mxu0 }
 0x16f   :  { %v349_v22 = vadd.f32 %v1685_v27, %v348_v16 }
 0x171   :  { %v429_v30 = vmax.f32 %v349_v22, 0.0 }
 0x172   :  { %v576_v19 = vpop.f32.mrf.mxu1 }
 0x173   :  { %v577_v20 = vadd.f32 %v1773_v55, %v576_v19 }
 0x175   :  { %v683_v23 = vmax.f32 %v577_v20, 0.0  ;;  %v644_v20 = vpop.f32.mrf.mxu3 }
 0x176   :  { %v350_v25 = vpop.f32.mrf.mxu0 }
 0x177   :  { %v351_v26 = vadd.f32 %v1685_v27, %v350_v25  ;;  %v726_v28 = vpack.c.bf16 %v683_v23, %v682_v21 }
 0x179   :  { %v430_v31 = vmax.f32 %v351_v26, 0.0  ;;  %844 = vmatmul.bf16.gmra.mxu2 %v726_v28 }
 0x17a   :  { %v579_v34 = vpop.f32.mrf.mxu1 }
 0x17b   :  { %v464_v35 = vpack.c.bf16 %v430_v31, %v429_v30  ;;  %v580_v39 = vadd.f32 %v1773_v55, %v579_v34  ;;  %v1827_v31 = vld [vmem:[%s1977_s2 + $0x2] ss:$0 sm:$0xff] }
 0x17d   :  { %618 = vmatmul.bf16.gmra.mxu1 %v464_v35  ;;  %v684_v42 = vmax.f32 %v580_v39, 0.0  ;;  %v646_v33 = vpop.f32.mrf.mxu3  ;;  %v645_v35 = vadd.f32 %v1773_v55, %v644_v20 }
 0x17e   :  { %v353_v38 = vpop.f32.mrf.mxu0  ;;  %v647_v37 = vadd.f32 %v1773_v55, %v646_v33 }
 0x17f   :  { %v354_v43 = vadd.f32 %v1685_v27, %v353_v38 }
 0x180   :  { %v711_v39 = vmax.f32 %v647_v37, 0.0 }
 0x181   :  { %v431_v48 = vmax.f32 %v354_v43, 0.0 }
 0x182   :  { %v581_v40 = vpop.f32.mrf.mxu1 }
 0x183   :  { %v582_v41 = vadd.f32 %v1773_v55, %v581_v40 }
 0x185   :  { %v685_v44 = vmax.f32 %v582_v41, 0.0 }
 0x186   :  { %v355_v45 = vpop.f32.mrf.mxu0 }
 0x187   :  { %v356_v46 = vadd.f32 %v1685_v27, %v355_v45  ;;  %v727_v47 = vpack.c.bf16 %v685_v44, %v684_v42  ;;  %v649_v45 = vpop.f32.mrf.mxu3 }
 0x189   :  { %v432_v49 = vmax.f32 %v356_v46, 0.0  ;;  %849 = vmatmul.bf16.gmra.mxu2 %v727_v47 }
 0x18a   :  { %v584_v50 = vpop.f32.mrf.mxu1 }
 0x18b   :  { %v465_v51 = vpack.c.bf16 %v432_v49, %v431_v48  ;;  %v585_v53 = vadd.f32 %v1773_v55, %v584_v50 }
 0x18d   :  { %623 = vmatmul.bf16.gmra.mxu1 %v465_v51  ;;  %v686_v57 = vmax.f32 %v585_v53, 0.0 }
 0x18e   :  { %v358_v52 = vpop.f32.mrf.mxu0 }
 0x18f   :  { %v359_v58 = vadd.f32 %v1685_v27, %v358_v52 }
 0x191   :  { %v433_v63 = vmax.f32 %v359_v58, 0.0  ;;  %v651_v58 = vpop.f32.mrf.mxu3 }
 0x192   :  { %v586_v54 = vpop.f32.mrf.mxu1 }
 0x193   :  { %v587_v56 = vadd.f32 %v1773_v55, %v586_v54 }
 0x195   :  { %v687_v59 = vmax.f32 %v587_v56, 0.0 }
 0x196   :  { %v360_v60 = vpop.f32.mrf.mxu0 }
 0x197   :  { %v361_v61 = vadd.f32 %v1685_v27, %v360_v60  ;;  %v728_v62 = vpack.c.bf16 %v687_v59, %v686_v57 }
 0x199   :  { %v434_v0 = vmax.f32 %v361_v61, 0.0  ;;  %854 = vmatmul.bf16.gmra.mxu2 %v728_v62  ;;  %v650_v62 = vadd.f32 %v1773_v55, %v649_v45 }
 0x19a   :  { %v589_v1 = vpop.f32.mrf.mxu1 }
 0x19b   :  { %v466_v2 = vpack.c.bf16 %v434_v0, %v433_v63  ;;  %v590_v4 = vadd.f32 %v1773_v55, %v589_v1  ;;  %v652_v63 = vadd.f32 %v1773_v55, %v651_v58 }
 0x19d   :  { %628 = vmatmul.bf16.gmra.mxu1 %v466_v2  ;;  %v688_v7 = vmax.f32 %v590_v4, 0.0  ;;  %v712_v2 = vmax.f32 %v650_v62, 0.0 }
 0x19e   :  { %v363_v3 = vpop.f32.mrf.mxu0 }
 0x19f   :  { %v364_v8 = vadd.f32 %v1685_v27, %v363_v3  ;;  %v713_v3 = vmax.f32 %v652_v63, 0.0 }
 0x1a1   :  { %v435_v13 = vmax.f32 %v364_v8, 0.0  ;;  %v741_v8 = vpack.c.bf16 %v713_v3, %v712_v2 }
 0x1a2   :  { %v591_v5 = vpop.f32.mrf.mxu1 }
 0x1a3   :  { %v592_v6 = vadd.f32 %v1773_v55, %v591_v5 }
 0x1a5   :  { %v689_v9 = vmax.f32 %v592_v6, 0.0 }
 0x1a6   :  { %v365_v10 = vpop.f32.mrf.mxu0 }
 0x1a7   :  { %v366_v11 = vadd.f32 %v1685_v27, %v365_v10  ;;  %v729_v12 = vpack.c.bf16 %v689_v9, %v688_v7 }
 0x1a9   :  { %v436_v14 = vmax.f32 %v366_v11, 0.0  ;;  %859 = vmatmul.bf16.gmra.mxu2 %v729_v12  ;;  %v654_v12 = vpop.f32.mrf.mxu3 }
 0x1aa   :  { %v594_v15 = vpop.f32.mrf.mxu1 }
 0x1ab   :  { %v467_v16 = vpack.c.bf16 %v436_v14, %v435_v13  ;;  %v595_v18 = vadd.f32 %v1773_v55, %v594_v15 }
 0x1ad   :  { %633 = vmatmul.bf16.gmra.mxu1 %v467_v16  ;;  %v690_v22 = vmax.f32 %v595_v18, 0.0 }
 0x1ae   :  { %v368_v17 = vpop.f32.mrf.mxu0 }
 0x1af   :  { %v369_v23 = vadd.f32 %v1685_v27, %v368_v17 }
 0x1b1   :  { %v437_v29 = vmax.f32 %v369_v23, 0.0 }
 0x1b2   :  { %v596_v19 = vpop.f32.mrf.mxu1 }
 0x1b3   :  { %v597_v21 = vadd.f32 %v1773_v55, %v596_v19 }
 0x1b5   :  { %v691_v24 = vmax.f32 %v597_v21, 0.0 }
 0x1b6   :  { %v370_v25 = vpop.f32.mrf.mxu0 }
 0x1b7   :  { %v371_v26 = vadd.f32 %v1685_v27, %v370_v25  ;;  %v730_v28 = vpack.c.bf16 %v691_v24, %v690_v22  ;;  %v710_v27 = vmax.f32 %v645_v35, 0.0  ;;  %v655_v35 = vadd.f32 %v1773_v55, %v654_v12 }
 0x1b9   :  { %v438_v30 = vmax.f32 %v371_v26, 0.0  ;;  %864 = vmatmul.bf16.gmra.mxu2 %v730_v28  ;;  %v740_v41 = vpack.c.bf16 %v711_v39, %v710_v27  ;;  %v714_v39 = vmax.f32 %v655_v35, 0.0 }
 0x1ba   :  { %v599_v32 = vpop.f32.mrf.mxu1 }
 0x1bb   :  { %v468_v34 = vpack.c.bf16 %v438_v30, %v437_v29  ;;  %v600_v42 = vadd.f32 %v1773_v55, %v599_v32  ;;  %914 = vmatmul.bf16.vlgmr.msra.gmra.mxu3 %v740_v41  ;;  %v656_v30 = vpop.f32.mrf.mxu3 }
 0x1bc   :  { %v825_v36 = vpop.f32.mrf.mxu2 }
 0x1bd   :  { %v826_v38 = vadd.f32 %v1827_v31, %v825_v36  ;;  %638 = vmatmul.bf16.gmra.mxu1 %v468_v34  ;;  %v692_v49 = vmax.f32 %v600_v42, 0.0  ;;  %v657_v36 = vadd.f32 %v1773_v55, %v656_v30 }
 0x1bf   :  { %v945_v40 = vmax.f32 %v826_v38, 0.0 }
 0x1c1   :  { %v995_v43 = vrot.slane %v945_v40, 4 }
 0x1c2   :  { %v601_v44 = vpop.f32.mrf.mxu1 }
 0x1c3   :  { %v996_v46 = vmax.f32 %v945_v40, %v995_v43  ;;  %v602_v47 = vadd.f32 %v1773_v55, %v601_v44  ;;  %v715_v40 = vmax.f32 %v657_v36, 0.0 }
 0x1c4   :  { %v827_v48 = vpop.f32.mrf.mxu2 }
 0x1c5   :  { %v693_v50 = vmax.f32 %v602_v47, 0.0  ;;  %v828_v51 = vadd.f32 %v1827_v31, %v827_v48  ;;  %v997_v52 = vrot.slane %v996_v46, 2  ;;  %v742_v44 = vpack.c.bf16 %v715_v40, %v714_v39  ;;  %v659_v48 = vpop.f32.mrf.mxu3 }
 0x1c7   :  { %v946_v53 = vmax.f32 %v828_v51, 0.0  ;;  %v731_v54 = vpack.c.bf16 %v693_v50, %v692_v49  ;;  %v998_v59 = vmax.f32 %v996_v46, %v997_v52 }
 0x1c9   :  { %v1001_v56 = vrot.slane %v946_v53, 4  ;;  %869 = vmatmul.bf16.gmra.mxu2 %v731_v54  ;;  %v999_v4 = vrot.slane %v998_v59, 1 }
 0x1ca   :  { %v604_v57 = vpop.f32.mrf.mxu1 }
 0x1cb   :  { %v1002_v60 = vmax.f32 %v946_v53, %v1001_v56  ;;  %v605_v7 = vadd.f32 %v1773_v55, %v604_v57  ;;  %919 = vmatmul.bf16.gmra.mxu3 %v741_v8  ;;  %v1000_v13 = vmax.f32 %v998_v59, %v999_v4  ;;  %v660_v4 = vadd.f32 %v1773_v55, %v659_v48 }
 0x1cc   :  { %v830_v61 = vpop.f32.mrf.mxu2 }
 0x1cd   :  { %v1003_v0 = vrot.slane %v1002_v60, 2  ;;  %v831_v1 = vadd.f32 %v1827_v31, %v830_v61  ;;  %v694_v17 = vmax.f32 %v605_v7, 0.0 }
 0x1cf   :  { %v1004_v5 = vmax.f32 %v1002_v60, %v1003_v0  ;;  %v947_v6 = vmax.f32 %v831_v1, 0.0  ;;  %v661_v1 = vpop.f32.mrf.mxu3 }
 0x1d1   :  { %v1005_v9 = vrot.slane %v1004_v5, 1  ;;  %v1007_v10 = vrot.slane %v947_v6, 4 }
 0x1d2   :  { %v606_v11 = vpop.f32.mrf.mxu1 }
 0x1d3   :  { %v1006_v14 = vmax.f32 %v1004_v5, %v1005_v9  ;;  %v1008_v15 = vmax.f32 %v947_v6, %v1007_v10  ;;  %v607_v16 = vadd.f32 %v1773_v55, %v606_v11  ;;  %v662_v6 = vadd.f32 %v1773_v55, %v661_v1 }
 0x1d4   :  { %v832_v18 = vpop.f32.mrf.mxu2  ;;  %v716_v10 = vmax.f32 %v660_v4, 0.0 }
 0x1d5   :  { %v1221_v19 = vsel %vm1220_vm0, %v1006_v14, %v1000_v13  ;;  %v1009_v20 = vrot.slane %v1008_v15, 2  ;;  %v695_v21 = vmax.f32 %v607_v16, 0.0  ;;  %v833_v22 = vadd.f32 %v1827_v31, %v832_v18 }
 0x1d6   :  { %v717_v11 = vmax.f32 %v662_v6, 0.0 }
 0x1d7   :  { %v1010_v23 = vmax.f32 %v1008_v15, %v1009_v20  ;;  %v948_v24 = vmax.f32 %v833_v22, 0.0  ;;  %v732_v25 = vpack.c.bf16 %v695_v21, %v694_v17 }
 0x1d8   :  { %v743_v15 = vpack.c.bf16 %v717_v11, %v716_v10 }
 0x1d9   :  { %v1011_v26 = vrot.slane %v1010_v23, 1  ;;  %v1013_v28 = vrot.slane %v948_v24, 4  ;;  %874 = vmatmul.bf16.gmra.mxu2 %v732_v25 }
 0x1da   :  { %v609_v29 = vpop.f32.mrf.mxu1 }
 0x1db   :  { %v1012_v32 = vmax.f32 %v1010_v23, %v1011_v26  ;;  %v1014_v33 = vmax.f32 %v948_v24, %v1013_v28  ;;  %v610_v43 = vadd.f32 %v1773_v55, %v609_v29  ;;  %924 = vmatmul.bf16.gmra.mxu3 %v742_v44 }
 0x1dc   :  { %v835_v34 = vpop.f32.mrf.mxu2 }
 0x1dd   :  { %v1223_v37 = vsel %vm1222_vm1, %v1012_v32, %v1221_v19  ;;  %v1015_v38 = vrot.slane %v1014_v33, 2  ;;  %v836_v27 = vadd.f32 %v1827_v31, %v835_v34  ;;  %v696_v52 = vmax.f32 %v610_v43, 0.0  ;;  %v664_v19 = vpop.f32.mrf.mxu3 }
 0x1de   :  { %v665_v39 = vadd.f32 %v1773_v55, %v664_v19 }
 0x1df   :  { %v1016_v41 = vmax.f32 %v1014_v33, %v1015_v38  ;;  %v949_v42 = vmax.f32 %v836_v27, 0.0 }
 0x1e1   :  { %v1017_v45 = vrot.slane %v1016_v41, 1  ;;  %v1019_v46 = vrot.slane %v949_v42, 4 }
 0x1e2   :  { %v611_v47 = vpop.f32.mrf.mxu1 }
 0x1e3   :  { %v1018_v49 = vmax.f32 %v1016_v41, %v1017_v45  ;;  %v1020_v50 = vmax.f32 %v949_v42, %v1019_v46  ;;  %v612_v51 = vadd.f32 %v1773_v55, %v611_v47  ;;  %v718_v45 = vmax.f32 %v665_v39, 0.0 }
 0x1e4   :  { %v837_v53 = vpop.f32.mrf.mxu2 }
 0x1e5   :  { %v1225_v54 = vsel %vm1224_vm2, %v1018_v49, %v1223_v37  ;;  %v1021_v56 = vrot.slane %v1020_v50, 2  ;;  %v697_v57 = vmax.f32 %v612_v51, 0.0  ;;  %v838_v58 = vadd.f32 %v1827_v31, %v837_v53  ;;  %v666_v37 = vpop.f32.mrf.mxu3 }
 0x1e6   :  { %v667_v41 = vadd.f32 %v1773_v55, %v666_v37 }
 0x1e7   :  { %v1022_v59 = vmax.f32 %v1020_v50, %v1021_v56  ;;  %v950_v60 = vmax.f32 %v838_v58, 0.0  ;;  %v733_v61 = vpack.c.bf16 %v697_v57, %v696_v52 }
 0x1e8   :  { %v719_v46 = vmax.f32 %v667_v41, 0.0 }
 0x1e9   :  { %v1023_v62 = vrot.slane %v1022_v59, 1  ;;  %v1025_v63 = vrot.slane %v950_v60, 4  ;;  %879 = vmatmul.bf16.gmra.mxu2 %v733_v61 }
 0x1ea   :  { %v614_v0 = vpop.f32.mrf.mxu1  ;;  %v744_v49 = vpack.c.bf16 %v719_v46, %v718_v45 }
 0x1eb   :  { %v1024_v2 = vmax.f32 %v1022_v59, %v1023_v62  ;;  %v1026_v3 = vmax.f32 %v950_v60, %v1025_v63  ;;  %v615_v14 = vadd.f32 %v1773_v55, %v614_v0  ;;  %929 = vmatmul.bf16.gmra.mxu3 %v743_v15 }
 0x1ec   :  { %v840_v5 = vpop.f32.mrf.mxu2 }
 0x1ed   :  { %v1227_v7 = vsel %vm1226_vm3, %v1024_v2, %v1225_v54  ;;  %v1027_v8 = vrot.slane %v1026_v3, 2  ;;  %v841_v9 = vadd.f32 %v1827_v31, %v840_v5  ;;  %v698_v23 = vmax.f32 %v615_v14, 0.0  ;;  %v669_v54 = vpop.f32.mrf.mxu3 }
 0x1ef   :  { %v1028_v12 = vmax.f32 %v1026_v3, %v1027_v8  ;;  %v951_v13 = vmax.f32 %v841_v9, 0.0  ;;  %v670_v8 = vadd.f32 %v1773_v55, %v669_v54 }
 0x1f1   :  { %v1029_v16 = vrot.slane %v1028_v12, 1  ;;  %v1031_v17 = vrot.slane %v951_v13, 4 }
 0x1f2   :  { %v616_v18 = vpop.f32.mrf.mxu1 }
 0x1f3   :  { %v1030_v20 = vmax.f32 %v1028_v12, %v1029_v16  ;;  %v1032_v21 = vmax.f32 %v951_v13, %v1031_v17  ;;  %v617_v22 = vadd.f32 %v1773_v55, %v616_v18  ;;  %v720_v13 = vmax.f32 %v670_v8, 0.0 }
 0x1f4   :  { %v842_v24 = vpop.f32.mrf.mxu2 }
 0x1f5   :  { %v1229_v25 = vsel %vm1228_vm4, %v1030_v20, %v1227_v7  ;;  %v1033_v26 = vrot.slane %v1032_v21, 2  ;;  %v699_v28 = vmax.f32 %v617_v22, 0.0  ;;  %v843_v29 = vadd.f32 %v1827_v31, %v842_v24  ;;  %v671_v5 = vpop.f32.mrf.mxu3 }
 0x1f6   :  { %v672_v10 = vadd.f32 %v1773_v55, %v671_v5 }
 0x1f7   :  { %v1034_v30 = vmax.f32 %v1032_v21, %v1033_v26  ;;  %v734_v32 = vpack.c.bf16 %v699_v28, %v698_v23  ;;  %v952_v33 = vmax.f32 %v843_v29, 0.0 }
 0x1f8   :  { %v721_v14 = vmax.f32 %v672_v10, 0.0 }
 0x1f9   :  { %v1035_v34 = vrot.slane %v1034_v30, 1  ;;  %v1037_v35 = vrot.slane %v952_v33, 4  ;;  %884 = vmatmul.bf16.gmra.mxu2 %v734_v32 }
 0x1fa   :  { %v619_v36 = vpop.f32.mrf.mxu1  ;;  %v745_v19 = vpack.c.bf16 %v721_v14, %v720_v13 }
 0x1fb   :  { %v1036_v38 = vmax.f32 %v1034_v30, %v1035_v34  ;;  %v1038_v27 = vmax.f32 %v952_v33, %v1037_v35  ;;  %v620_v51 = vadd.f32 %v1773_v55, %v619_v36  ;;  %934 = vmatmul.bf16.gmra.mxu3 %v744_v49 }
 0x1fc   :  { %v845_v40 = vpop.f32.mrf.mxu2 }
 0x1fd   :  { %v1231_v42 = vsel %vm1230_vm5, %v1036_v38, %v1229_v25  ;;  %v1039_v43 = vrot.slane %v1038_v27, 2  ;;  %v846_v44 = vadd.f32 %v1827_v31, %v845_v40  ;;  %v700_v61 = vmax.f32 %v620_v51, 0.0 }
 0x1ff   :  { %v1040_v47 = vmax.f32 %v1038_v27, %v1039_v43  ;;  %v953_v48 = vmax.f32 %v846_v44, 0.0 }
 0x201   :  { %v1041_v50 = vrot.slane %v1040_v47, 1  ;;  %v1043_v52 = vrot.slane %v953_v48, 4 }
 0x202   :  { %v621_v53 = vpop.f32.mrf.mxu1 }
 0x203   :  { %v1042_v56 = vmax.f32 %v1040_v47, %v1041_v50  ;;  %v1044_v57 = vmax.f32 %v953_v48, %v1043_v52  ;;  %v622_v58 = vadd.f32 %v1773_v55, %v621_v53 }
 0x204   :  { %v847_v59 = vpop.f32.mrf.mxu2 }
 0x205   :  { %v1865_v60 = vsel %vm1232_vm6, %v1042_v56, %v1231_v42  ;;  %v701_v62 = vmax.f32 %v622_v58, 0.0  ;;  %v848_v63 = vadd.f32 %v1827_v31, %v847_v59  ;;  %v1045_v0 = vrot.slane %v1044_v57, 2 }
 0x207   :  { %v735_v1 = vpack.c.bf16 %v701_v62, %v700_v61  ;;  %v954_v2 = vmax.f32 %v848_v63, 0.0  ;;  %v1046_v6 = vmax.f32 %v1044_v57, %v1045_v0 }
 0x209   :  { %v1049_v3 = vrot.slane %v954_v2, 4  ;;  %889 = vmatmul.bf16.gmra.mxu2 %v735_v1  ;;  %v1047_v15 = vrot.slane %v1046_v6, 1 }
 0x20a   :  { %v624_v4 = vpop.f32.mrf.mxu1 }
 0x20b   :  { %v1050_v7 = vmax.f32 %v954_v2, %v1049_v3  ;;  %v625_v18 = vadd.f32 %v1773_v55, %v624_v4  ;;  %939 = vmatmul.bf16.gmra.mxu3 %v745_v19  ;;  %v1048_v23 = vmax.f32 %v1046_v6, %v1047_v15 }
 0x20c   :  { %v850_v9 = vpop.f32.mrf.mxu2 }
 0x20d   :  { %v1051_v11 = vrot.slane %v1050_v7, 2  ;;  %v851_v12 = vadd.f32 %v1827_v31, %v850_v9  ;;  %v702_v28 = vmax.f32 %v625_v18, 0.0 }
 0x20f   :  { %v1052_v16 = vmax.f32 %v1050_v7, %v1051_v11  ;;  %v955_v17 = vmax.f32 %v851_v12, 0.0 }
 0x211   :  { %v1053_v20 = vrot.slane %v1052_v16, 1  ;;  %v1055_v21 = vrot.slane %v955_v17, 4 }
 0x212   :  { %v626_v22 = vpop.f32.mrf.mxu1 }
 0x213   :  { %v1054_v24 = vmax.f32 %v1052_v16, %v1053_v20  ;;  %v1056_v25 = vmax.f32 %v955_v17, %v1055_v21  ;;  %v627_v26 = vadd.f32 %v1773_v55, %v626_v22 }
 0x214   :  { %v852_v29 = vpop.f32.mrf.mxu2 }
 0x215   :  { %v1234_v30 = vsel %vm1220_vm0, %v1054_v24, %v1048_v23  ;;  %v1057_v32 = vrot.slane %v1056_v25, 2  ;;  %v703_v33 = vmax.f32 %v627_v26, 0.0  ;;  %v853_v34 = vadd.f32 %v1827_v31, %v852_v29 }
 0x217   :  { %v1058_v35 = vmax.f32 %v1056_v25, %v1057_v32  ;;  %v736_v36 = vpack.c.bf16 %v703_v33, %v702_v28  ;;  %v956_v37 = vmax.f32 %v853_v34, 0.0 }
 0x219   :  { %v1059_v38 = vrot.slane %v1058_v35, 1  ;;  %v1061_v27 = vrot.slane %v956_v37, 4  ;;  %894 = vmatmul.bf16.gmra.mxu2 %v736_v36 }
 0x21a   :  { %v629_v39 = vpop.f32.mrf.mxu1 }
 0x21b   :  { %v1060_v40 = vmax.f32 %v1058_v35, %v1059_v38  ;;  %v1062_v41 = vmax.f32 %v956_v37, %v1061_v27  ;;  %v630_v48 = vadd.f32 %v1773_v55, %v629_v39 }
 0x21c   :  { %v855_v42 = vpop.f32.mrf.mxu2 }
 0x21d   :  { %v1235_v43 = vsel %vm1222_vm1, %v1060_v40, %v1234_v30  ;;  %v1063_v44 = vrot.slane %v1062_v41, 2  ;;  %v856_v45 = vadd.f32 %v1827_v31, %v855_v42  ;;  %v704_v56 = vmax.f32 %v630_v48, 0.0 }
 0x21f   :  { %v1064_v46 = vmax.f32 %v1062_v41, %v1063_v44  ;;  %v957_v47 = vmax.f32 %v856_v45, 0.0 }
 0x221   :  { %v1065_v49 = vrot.slane %v1064_v46, 1  ;;  %v1067_v50 = vrot.slane %v957_v47, 4 }
 0x222   :  { %v631_v51 = vpop.f32.mrf.mxu1 }
 0x223   :  { %v1066_v52 = vmax.f32 %v1064_v46, %v1065_v49  ;;  %v1068_v53 = vmax.f32 %v957_v47, %v1067_v50  ;;  %v632_v54 = vadd.f32 %v1773_v55, %v631_v51 }
 0x224   :  { %v857_v57 = vpop.f32.mrf.mxu2 }
 0x225   :  { %v1236_v58 = vsel %vm1224_vm2, %v1066_v52, %v1235_v43  ;;  %v1069_v59 = vrot.slane %v1068_v53, 2  ;;  %v705_v61 = vmax.f32 %v632_v54, 0.0  ;;  %v858_v62 = vadd.f32 %v1827_v31, %v857_v57 }
 0x227   :  { %v1070_v63 = vmax.f32 %v1068_v53, %v1069_v59  ;;  %v737_v0 = vpack.c.bf16 %v705_v61, %v704_v56  ;;  %v958_v1 = vmax.f32 %v858_v62, 0.0 }
 0x229   :  { %v1071_v2 = vrot.slane %v1070_v63, 1  ;;  %v1073_v3 = vrot.slane %v958_v1, 4  ;;  %899 = vmatmul.bf16.gmra.mxu2 %v737_v0 }
 0x22a   :  { %v634_v4 = vpop.f32.mrf.mxu1 }
 0x22b   :  { %v1072_v5 = vmax.f32 %v1070_v63, %v1071_v2  ;;  %v1074_v6 = vmax.f32 %v958_v1, %v1073_v3  ;;  %v635_v13 = vadd.f32 %v1773_v55, %v634_v4 }
 0x22c   :  { %v860_v7 = vpop.f32.mrf.mxu2 }
 0x22d   :  { %v1237_v8 = vsel %vm1226_vm3, %v1072_v5, %v1236_v58  ;;  %v1075_v9 = vrot.slane %v1074_v6, 2  ;;  %v861_v10 = vadd.f32 %v1827_v31, %v860_v7  ;;  %v706_v20 = vmax.f32 %v635_v13, 0.0 }
 0x22f   :  { %v1076_v11 = vmax.f32 %v1074_v6, %v1075_v9  ;;  %v959_v12 = vmax.f32 %v861_v10, 0.0 }
 0x231   :  { %v1077_v14 = vrot.slane %v1076_v11, 1  ;;  %v1079_v15 = vrot.slane %v959_v12, 4 }
 0x232   :  { %v636_v16 = vpop.f32.mrf.mxu1 }
 0x233   :  { %v1078_v17 = vmax.f32 %v1076_v11, %v1077_v14  ;;  %v1080_v18 = vmax.f32 %v959_v12, %v1079_v15  ;;  %v637_v19 = vadd.f32 %v1773_v55, %v636_v16 }
 0x234   :  { %v862_v21 = vpop.f32.mrf.mxu2 }
 0x235   :  { %v1238_v22 = vsel %vm1228_vm4, %v1078_v17, %v1237_v8  ;;  %v1081_v23 = vrot.slane %v1080_v18, 2  ;;  %v707_v24 = vmax.f32 %v637_v19, 0.0  ;;  %v863_v25 = vadd.f32 %v1827_v31, %v862_v21 }
 0x237   :  { %v1082_v26 = vmax.f32 %v1080_v18, %v1081_v23  ;;  %v738_v28 = vpack.c.bf16 %v707_v24, %v706_v20  ;;  %v960_v29 = vmax.f32 %v863_v25, 0.0 }
 0x239   :  { %v1083_v30 = vrot.slane %v1082_v26, 1  ;;  %v1085_v32 = vrot.slane %v960_v29, 4  ;;  %904 = vmatmul.bf16.gmra.mxu2 %v738_v28 }
 0x23a   :  { %v639_v33 = vpop.f32.mrf.mxu1 }
 0x23b   :  { %v1084_v34 = vmax.f32 %v1082_v26, %v1083_v30  ;;  %v1086_v35 = vmax.f32 %v960_v29, %v1085_v32  ;;  %v640_v40 = vadd.f32 %v1773_v55, %v639_v33 }
 0x23c   :  { %v865_v36 = vpop.f32.mrf.mxu2 }
 0x23d   :  { %v1239_v37 = vsel %vm1230_vm5, %v1084_v34, %v1238_v22  ;;  %v1087_v38 = vrot.slane %v1086_v35, 2  ;;  %v866_v43 = vadd.f32 %v1827_v31, %v865_v36  ;;  %v708_v47 = vmax.f32 %v640_v40, 0.0 }
 0x23e   :  { %v915_v50 = vpop.f32.mrf.mxu3 }
 0x23f   :  { %v1088_v27 = vmax.f32 %v1086_v35, %v1087_v38  ;;  %v961_v51 = vmax.f32 %v866_v43, 0.0  ;;  %v916_v57 = vadd.f32 %v1827_v31, %v915_v50 }
 0x241   :  { %v1089_v39 = vrot.slane %v1088_v27, 1  ;;  %v981_v59 = vmax.f32 %v916_v57, 0.0 }
 0x242   :  { %v641_v41 = vpop.f32.mrf.mxu1 }
 0x243   :  { %v1090_v42 = vmax.f32 %v1088_v27, %v1089_v39  ;;  %v642_v44 = vadd.f32 %v1773_v55, %v641_v41 }
 0x244   :  { %v867_v45 = vpop.f32.mrf.mxu2 }
 0x245   :  { %v1892_v46 = vsel %vm1232_vm6, %v1090_v42, %v1239_v37  ;;  %v709_v48 = vmax.f32 %v642_v44, 0.0  ;;  %v868_v49 = vadd.f32 %v1827_v31, %v867_v45 }
 0x246   :  { %v917_v58 = vpop.f32.mrf.mxu3 }
 0x247   :  { %v739_v52 = vpack.c.bf16 %v709_v48, %v708_v47  ;;  %v962_v53 = vmax.f32 %v868_v49, 0.0  ;;  %v918_v55 = vadd.f32 %v1827_v31, %v917_v58 }
 0x249   :  { %v1091_v54 = vmax.f32 %v961_v51, %v962_v53  ;;  %909 = vmatmul.bf16.gmra.mxu2 %v739_v52  ;;  %v982_v61 = vmax.f32 %v918_v55, 0.0 }
 0x24b   :  { %v1092_v62 = vrot.slane %v1091_v54, 4  ;;  %v1897_v63 = vmax.f32 %v981_v59, %v982_v61 }
 0x24c   :  { %v870_v56 = vpop.f32.mrf.mxu2 }
 0x24d   :  { %v871_v0 = vadd.f32 %v1827_v31, %v870_v56  ;;  %v1093_v2 = vmax.f32 %v1091_v54, %v1092_v62 }
 0x24e   :  { %v1904_v29 = vpop.f32.mrf.mxu3 }
 0x24f   :  { %v963_v4 = vmax.f32 %v871_v0, 0.0  ;;  %v1094_v6 = vrot.slane %v1093_v2, 2 }
 0x251   :  { %v1095_v10 = vmax.f32 %v1093_v2, %v1094_v6 }
 0x253   :  { %v1096_v13 = vrot.slane %v1095_v10, 1 }
 0x254   :  { %v872_v1 = vpop.f32.mrf.mxu2 }
 0x255   :  { %v873_v3 = vadd.f32 %v1827_v31, %v872_v1  ;;  %v1097_v18 = vmax.f32 %v1095_v10, %v1096_v13 }
 0x256   :  { %v1909_v40 = vpop.f32.mrf.mxu3 }
 0x257   :  { %v964_v5 = vmax.f32 %v873_v3, 0.0 }
 0x259   :  { %v1098_v7 = vmax.f32 %v963_v4, %v964_v5 }
 0x25b   :  { %v1099_v8 = vrot.slane %v1098_v7, 4 }
 0x25c   :  { %v875_v9 = vpop.f32.mrf.mxu2 }
 0x25d   :  { %v1100_v11 = vmax.f32 %v1098_v7, %v1099_v8  ;;  %v876_v16 = vadd.f32 %v1827_v31, %v875_v9 }
 0x25e   :  { %v1911_v48 = vpop.f32.mrf.mxu3 }
 0x25f   :  { %v1101_v12 = vrot.slane %v1100_v11, 2  ;;  %v965_v22 = vmax.f32 %v876_v16, 0.0 }
 0x261   :  { %v1102_v14 = vmax.f32 %v1100_v11, %v1101_v12 }
 0x263   :  { %v1103_v15 = vrot.slane %v1102_v14, 1 }
 0x264   :  { %v877_v17 = vpop.f32.mrf.mxu2 }
 0x265   :  { %v1104_v19 = vmax.f32 %v1102_v14, %v1103_v15  ;;  %v878_v20 = vadd.f32 %v1827_v31, %v877_v17 }
 0x266   :  { %v1914_v54 = vpop.f32.mrf.mxu3 }
 0x267   :  { %v1259_v21 = vsel %vm1220_vm0, %v1104_v19, %v1097_v18  ;;  %v966_v23 = vmax.f32 %v878_v20, 0.0 }
 0x269   :  { %v1105_v24 = vmax.f32 %v965_v22, %v966_v23 }
 0x26b   :  { %v1106_v25 = vrot.slane %v1105_v24, 4 }
 0x26c   :  { %v880_v26 = vpop.f32.mrf.mxu2 }
 0x26d   :  { %v1107_v28 = vmax.f32 %v1105_v24, %v1106_v25  ;;  %v881_v34 = vadd.f32 %v1827_v31, %v880_v26 }
 0x26e   :  { %v1916_v57 = vpop.f32.mrf.mxu3 }
 0x26f   :  { %v1108_v30 = vrot.slane %v1107_v28, 2  ;;  %v967_v27 = vmax.f32 %v881_v34, 0.0 }
 0x271   :  { %v1109_v32 = vmax.f32 %v1107_v28, %v1108_v30 }
 0x273   :  { %v1110_v33 = vrot.slane %v1109_v32, 1 }
 0x274   :  { %v882_v35 = vpop.f32.mrf.mxu2 }
 0x275   :  { %v1111_v36 = vmax.f32 %v1109_v32, %v1110_v33  ;;  %v883_v37 = vadd.f32 %v1827_v31, %v882_v35 }
 0x276   :  { %v1919_v59 = vpop.f32.mrf.mxu3 }
 0x277   :  { %v1260_v38 = vsel %vm1222_vm1, %v1111_v36, %v1259_v21  ;;  %v968_v39 = vmax.f32 %v883_v37, 0.0 }
 0x279   :  { %v1112_v41 = vmax.f32 %v967_v27, %v968_v39 }
 0x27b   :  { %v1113_v42 = vrot.slane %v1112_v41, 4 }
 0x27c   :  { %v885_v43 = vpop.f32.mrf.mxu2 }
 0x27d   :  { %v1114_v44 = vmax.f32 %v1112_v41, %v1113_v42  ;;  %v886_v62 = vadd.f32 %v1827_v31, %v885_v43  ;;  %v993_v41 = vlaneseq }
 0x27e   :  { %v935_v13 = vpop.f32.mrf.mxu3 }
 0x27f   :  { %v1115_v45 = vrot.slane %v1114_v44, 2  ;;  %v969_v6 = vmax.f32 %v886_v62, 0.0 }
 0x281   :  { %v1116_v47 = vmax.f32 %v1114_v44, %v1115_v45 }
 0x283   :  { %v1117_v49 = vrot.slane %v1116_v47, 1 }
 0x284   :  { %v887_v50 = vpop.f32.mrf.mxu2 }
 0x285   :  { %v1118_v51 = vmax.f32 %v1116_v47, %v1117_v49  ;;  %v888_v55 = vadd.f32 %v1827_v31, %v887_v50  ;;  %v1928_v50 = vand.u32 127, %v993_v41 }
 0x286   :  { %v937_v23 = vpop.f32.mrf.mxu3 }
 0x287   :  { %v1261_v52 = vsel %vm1224_vm2, %v1118_v51, %v1260_v38  ;;  %v970_v1 = vmax.f32 %v888_v55, 0.0  ;;  %vm1203_vm7 = vcmp.lt.s32.totalorder %v1928_v50, 32 }
 0x289   :  { %v1119_v9 = vmax.f32 %v969_v6, %v970_v1  ;;  %v921_v1 = vadd.f32 %v1827_v31, %v1904_v29  ;;  %v928_v6 = vadd.f32 %v1827_v31, %v1914_v54  ;;  %v938_v54 = vadd.f32 %v1827_v31, %v937_v23 }
 0x28b   :  { %v1120_v14 = vrot.slane %v1119_v9, 4 }
 0x28c   :  { %v890_v53 = vpop.f32.mrf.mxu2 }
 0x28d   :  { %v891_v0 = vadd.f32 %v1827_v31, %v890_v53  ;;  %v1121_v18 = vmax.f32 %v1119_v9, %v1120_v14 }
 0x28e   :  { %v940_v44 = vpop.f32.mrf.mxu3 }
 0x28f   :  { %v971_v7 = vmax.f32 %v891_v0, 0.0  ;;  %v1122_v22 = vrot.slane %v1121_v18, 2 }
 0x291   :  { %v1123_v33 = vmax.f32 %v1121_v18, %v1122_v22 }
 0x293   :  { %v1124_v38 = vrot.slane %v1123_v33, 1 }
 0x294   :  { %v892_v56 = vpop.f32.mrf.mxu2 }
 0x295   :  { %v893_v61 = vadd.f32 %v1827_v31, %v892_v56  ;;  %v1125_v47 = vmax.f32 %v1123_v33, %v1124_v38 }
 0x296   :  { %v942_v29 = vpop.f32.mrf.mxu3 }
 0x297   :  { %v972_v4 = vmax.f32 %v893_v61, 0.0  ;;  %v943_v14 = vadd.f32 %v1827_v31, %v942_v29 }
 0x299   :  { %v1126_v11 = vmax.f32 %v971_v7, %v972_v4 }
 0x29b   :  { %v1127_v16 = vrot.slane %v1126_v11, 4 }
 0x29c   :  { %v895_v58 = vpop.f32.mrf.mxu2 }
 0x29d   :  { %v896_v2 = vadd.f32 %v1827_v31, %v895_v58  ;;  %v1128_v19 = vmax.f32 %v1126_v11, %v1127_v16  ;;  %v1262_v58 = vsel %vm1226_vm3, %v1125_v47, %v1261_v52 }
 0x29f   :  { %v973_v10 = vmax.f32 %v896_v2, 0.0  ;;  %v1129_v25 = vrot.slane %v1128_v19, 2 }
 0x2a1   :  { %v1130_v34 = vmax.f32 %v1128_v19, %v1129_v25 }
 0x2a3   :  { %v1131_v39 = vrot.slane %v1130_v34, 1 }
 0x2a4   :  { %v897_v3 = vpop.f32.mrf.mxu2 }
 0x2a5   :  { %v898_v5 = vadd.f32 %v1827_v31, %v897_v3  ;;  %v1132_v49 = vmax.f32 %v1130_v34, %v1131_v39  ;;  %v923_v3 = vadd.f32 %v1827_v31, %v1909_v40  ;;  %v933_v40 = vadd.f32 %v1827_v31, %v1919_v59 }
 0x2a7   :  { %v974_v8 = vmax.f32 %v898_v5, 0.0  ;;  %v1263_v61 = vsel %vm1228_vm4, %v1132_v49, %v1262_v58  ;;  %v926_v5 = vadd.f32 %v1827_v31, %v1911_v48  ;;  %v983_v48 = vmax.f32 %v921_v1, 0.0 }
 0x2a8   :  { %v984_v11 = vmax.f32 %v923_v3, 0.0 }
 0x2a9   :  { %v1133_v12 = vmax.f32 %v973_v10, %v974_v8  ;;  %v931_v8 = vadd.f32 %v1827_v31, %v1916_v57  ;;  %v936_v10 = vadd.f32 %v1827_v31, %v935_v13  ;;  %v985_v57 = vmax.f32 %v926_v5, 0.0 }
 0x2ab   :  { %v1134_v17 = vrot.slane %v1133_v12, 4  ;;  %v987_v59 = vmax.f32 %v931_v8, 0.0  ;;  %v989_v19 = vmax.f32 %v936_v10, 0.0 }
 0x2ac   :  { %v900_v15 = vpop.f32.mrf.mxu2 }
 0x2ad   :  { %v1135_v20 = vmax.f32 %v1133_v12, %v1134_v17  ;;  %v901_v21 = vadd.f32 %v1827_v31, %v900_v15  ;;  %v986_v15 = vmax.f32 %v928_v6, 0.0  ;;  %v988_v17 = vmax.f32 %v933_v40, 0.0 }
 0x2af   :  { %v1136_v28 = vrot.slane %v1135_v20, 2  ;;  %v975_v30 = vmax.f32 %v901_v21, 0.0  ;;  %v1168_v21 = vmax.f32 %v983_v48, %v984_v11  ;;  %v1175_v13 = vmax.f32 %v985_v57, %v986_v15 }
 0x2b0   :  { %v1182_v25 = vmax.f32 %v987_v59, %v988_v17 }
 0x2b1   :  { %v1137_v36 = vmax.f32 %v1135_v20, %v1136_v28  ;;  %v990_v20 = vmax.f32 %v938_v54, 0.0  ;;  %v1176_v34 = vrot.slane %v1175_v13, 4 }
 0x2b3   :  { %v1138_v43 = vrot.slane %v1137_v36, 1  ;;  %v1189_v28 = vmax.f32 %v989_v19, %v990_v20 }
 0x2b4   :  { %v902_v24 = vpop.f32.mrf.mxu2 }
 0x2b5   :  { %v903_v26 = vadd.f32 %v1827_v31, %v902_v24  ;;  %v1139_v53 = vmax.f32 %v1137_v36, %v1138_v43  ;;  %v992_v24 = vmax.f32 %v943_v14, 0.0  ;;  %v1183_v36 = vrot.slane %v1182_v25, 4 }
 0x2b6   :  { %v1190_v39 = vrot.slane %v1189_v28, 4 }
 0x2b7   :  { %v976_v32 = vmax.f32 %v903_v26, 0.0  ;;  %v1264_v2 = vsel %vm1230_vm5, %v1139_v53, %v1263_v61  ;;  %v1162_v26 = vrot.slane %v1897_v63, 4  ;;  %v1184_v47 = vmax.f32 %v1182_v25, %v1183_v36 }
 0x2b9   :  { %v1140_v35 = vmax.f32 %v975_v30, %v976_v32  ;;  %v1169_v30 = vrot.slane %v1168_v21, 4 }
 0x2bb   :  { %v1141_v37 = vrot.slane %v1140_v35, 4  ;;  %v1170_v41 = vmax.f32 %v1168_v21, %v1169_v30 }
 0x2bc   :  { %v905_v27 = vpop.f32.mrf.mxu2 }
 0x2bd   :  { %v1142_v42 = vmax.f32 %v1140_v35, %v1141_v37  ;;  %v906_v52 = vadd.f32 %v1827_v31, %v905_v27  ;;  %v1163_v27 = vmax.f32 %v1897_v63, %v1162_v26  ;;  %v1171_v58 = vrot.slane %v1170_v41, 2 }
 0x2bf   :  { %v1143_v45 = vrot.slane %v1142_v42, 2  ;;  %v977_v12 = vmax.f32 %v906_v52, 0.0  ;;  %v1164_v53 = vrot.slane %v1163_v27, 2  ;;  %v1172_v3 = vmax.f32 %v1170_v41, %v1171_v58 }
 0x2c1   :  { %v1144_v51 = vmax.f32 %v1142_v42, %v1143_v45  ;;  %v1177_v45 = vmax.f32 %v1175_v13, %v1176_v34 }
 0x2c3   :  { %v1145_v56 = vrot.slane %v1144_v51, 1 }
 0x2c4   :  { %v907_v55 = vpop.f32.mrf.mxu2 }
 0x2c5   :  { %v1146_v62 = vmax.f32 %v1144_v51, %v1145_v56  ;;  %v908_v0 = vadd.f32 %v1827_v31, %v907_v55  ;;  %v1191_v56 = vmax.f32 %v1189_v28, %v1190_v39 }
 0x2c7   :  { %v1265_v4 = vsel %vm1232_vm6, %v1146_v62, %v1264_v2  ;;  %v978_v9 = vmax.f32 %v908_v0, 0.0  ;;  %v1178_v62 = vrot.slane %v1177_v45, 2  ;;  %v1185_v0 = vrot.slane %v1184_v47, 2 }
 0x2c8   :  { %v1275_v7 = vsel %vm1203_vm7, %v1865_v60, %v1265_v4  ;;  %v941_v60 = vadd.f32 %v1827_v31, %v940_v44  ;;  %v1165_v2 = vmax.f32 %v1163_v27, %v1164_v53  ;;  %v1192_v63 = vrot.slane %v1191_v56, 2 }
 0x2c9   :  { %1277 = vst [vmem:[%s1979_s3] sm:$0xff] %v1275_v7  ;;  %v1147_v18 = vmax.f32 %v977_v12, %v978_v9  ;;  %v1179_v5 = vmax.f32 %v1177_v45, %v1178_v62  ;;  %v1186_v6 = vmax.f32 %v1184_v47, %v1185_v0  ;;  %v1173_v9 = vrot.slane %v1172_v3, 1 }
 0x2ca   :  { %v991_v22 = vmax.f32 %v941_v60, 0.0  ;;  %v1166_v8 = vrot.slane %v1165_v2, 1  ;;  %v1193_v40 = vmax.f32 %v1191_v56, %v1192_v63 }
 0x2cb   :  { %v1148_v23 = vrot.slane %v1147_v18, 4  ;;  %v1180_v54 = vrot.slane %v1179_v5, 1  ;;  %v1187_v11 = vrot.slane %v1186_v6, 1  ;;  %v1174_v15 = vmax.f32 %v1172_v3, %v1173_v9 }
 0x2cc   :  { %v910_v16 = vpop.f32.mrf.mxu2  ;;  %v1196_v32 = vmax.f32 %v991_v22, %v992_v24  ;;  %v1167_v14 = vmax.f32 %v1165_v2, %v1166_v8  ;;  %v1194_v57 = vrot.slane %v1193_v40, 1 }
 0x2cd   :  { %v911_v33 = vadd.f32 %v1827_v31, %v910_v16  ;;  %v1149_v37 = vmax.f32 %v1147_v18, %v1148_v23  ;;  %v1181_v17 = vmax.f32 %v1179_v5, %v1180_v54  ;;  %v1188_v19 = vmax.f32 %v1186_v6, %v1187_v11 }
 0x2ce   :  { %v1197_v42 = vrot.slane %v1196_v32, 4  ;;  %v1195_v21 = vmax.f32 %v1193_v40, %v1194_v57 }
 0x2cf   :  { %v979_v43 = vmax.f32 %v911_v33, 0.0  ;;  %v1150_v49 = vrot.slane %v1149_v37, 2 }
 0x2d0   :  { %v1198_v55 = vmax.f32 %v1196_v32, %v1197_v42 }
 0x2d1   :  { %v1151_v1 = vmax.f32 %v1149_v37, %v1150_v49 }
 0x2d2   :  { %v1199_v4 = vrot.slane %v1198_v55, 2 }
 0x2d3   :  { %v1152_v7 = vrot.slane %v1151_v1, 1 }
 0x2d4   :  { %v912_v35 = vpop.f32.mrf.mxu2  ;;  %v1200_v48 = vmax.f32 %v1198_v55, %v1199_v4 }
 0x2d5   :  { %v913_v38 = vadd.f32 %v1827_v31, %v912_v35  ;;  %v1153_v60 = vmax.f32 %v1151_v1, %v1152_v7 }
 0x2d6   :  { %v1201_v16 = vrot.slane %v1200_v48, 1 }
 0x2d7   :  { %v980_v44 = vmax.f32 %v913_v38, 0.0 }
 0x2d8   :  { %v1202_v24 = vmax.f32 %v1200_v48, %v1201_v16 }
 0x2d9   :  { %v1154_v51 = vmax.f32 %v979_v43, %v980_v44 }
 0x2db   :  { %v1155_v61 = vrot.slane %v1154_v51, 4 }
 0x2dd   :  { %v1156_v31 = vmax.f32 %v1154_v51, %v1155_v61 }
 0x2df   :  { %v1157_v52 = vrot.slane %v1156_v31, 2 }
 0x2e1   :  { %v1158_v29 = vmax.f32 %v1156_v31, %v1157_v52 }
 0x2e3   :  { %v1159_v10 = vrot.slane %v1158_v29, 1 }
 0x2e5   :  { %v1160_v12 = vmax.f32 %v1158_v29, %v1159_v10 }
 0x2e7   :  { %v1266_v59 = vsel %vm1220_vm0, %v1160_v12, %v1153_v60 }
 0x2e8   :  { %v1267_v18 = vsel %vm1222_vm1, %v1167_v14, %v1266_v59 }
 0x2e9   :  { %v1268_v20 = vsel %vm1224_vm2, %v1174_v15, %v1267_v18 }
 0x2ea   :  { %v1269_v22 = vsel %vm1226_vm3, %v1181_v17, %v1268_v20 }
 0x2eb   :  { %v1270_v13 = vsel %vm1228_vm4, %v1188_v19, %v1269_v22 }
 0x2ec   :  { %v1271_v25 = vsel %vm1230_vm5, %v1195_v21, %v1270_v13 }
 0x2ed   :  { %v1272_v23 = vsel %vm1232_vm6, %v1202_v24, %v1271_v25 }
 0x2ee   :  { %v1276_v26 = vsel %vm1203_vm7, %v1892_v46, %v1272_v23 }
 0x2ef   :  { %1278 = vst [vmem:[%s1979_s3 + $0x8] sm:$0xff] %v1276_v26 }

</bundles_post_ra>
